<compile_context>
chip_gen: v7x
topology: tpu7x:2x2x1
jax: 0.10.0
libtpu: 0.0.40
codegen_flags: <defaults>
</compile_context>

<pallas_src>
import jax
import jax.numpy as jnp
from jax import lax
from jax.experimental import pallas as pl
from jax.experimental.pallas import tpu as pltpu

_LANE = 128
_SUBLANE = 8


def _round_up(x, m):
    return ((x + m - 1) // m) * m


def _mlp_kernel(x_ref, w1_ref, b1_ref, w2_ref, b2_ref, o_ref):
    # x_ref : (TILE_B, n_features)      bf16
    # w1_ref: (nh_pad, n_features)      bf16  (PyTorch layout, contract dim 1)
    # b1_ref: (1, nh_pad)               f32
    # w2_ref: (nc_pad, nh_pad)          bf16  (PyTorch layout, contract dim 1)
    # b2_ref: (1, nc_pad)               f32
    # o_ref : (TILE_B, nc_pad)          f32   (lane-dense, unmasked stores)

    # Layer 1: x @ W1^T directly on the MXU (no transpose materialized),
    # f32 accumulation; bias + ReLU in f32 on the VPU.
    h = lax.dot_general(
        x_ref[...], w1_ref[...],
        dimension_numbers=(((1,), (1,)), ((), ())),
        preferred_element_type=jnp.float32)
    h = jnp.maximum(h + b1_ref[...], 0.0)

    # Layer 2: h @ W2^T (bf16 MXU inputs, f32 accumulation), bias + sigmoid
    # in f32 (sigmoid exp goes to the EUP slot), store f32 lane-dense.
    z = lax.dot_general(
        h.astype(w2_ref.dtype), w2_ref[...],
        dimension_numbers=(((1,), (1,)), ((), ())),
        preferred_element_type=jnp.float32)
    z = z + b2_ref[...]
    o_ref[...] = jax.nn.sigmoid(z).astype(o_ref.dtype)


def net_forward(x, w1, b1, w2, b2, *, tile_b=512):
    """x: [B, n_features]; w1: [n_hidden, n_features]; b1: [n_hidden];
       w2: [n_classes, n_hidden]; b2: [n_classes]  (PyTorch Linear layouts,
       consumed directly -- no per-call transposes)."""
    B, n_features = x.shape
    n_hidden = w1.shape[0]
    n_classes = w2.shape[0]

    # Batch tile: multiple of the 8-row sublane tile, capped at `tile_b` rows.
    tile_b = min(tile_b, _round_up(B, _SUBLANE))
    b_pad = _round_up(B, tile_b)

    # Lane-dense hidden + output: pad both feature-producing dims to 128 lanes.
    nh_pad = _round_up(n_hidden, _LANE)
    nc_pad = _round_up(n_classes, _LANE)

    # bf16 matmul operands; biases stay f32.
    x_bf = x.astype(jnp.bfloat16)
    if b_pad != B:
        x_bf = jnp.pad(x_bf, ((0, b_pad - B), (0, 0)))

    w1_bf = w1.astype(jnp.bfloat16)                       # [n_hidden, n_features]
    b1_2d = b1.astype(jnp.float32)[None, :]               # [1, n_hidden]
    if nh_pad != n_hidden:
        w1_bf = jnp.pad(w1_bf, ((0, nh_pad - n_hidden), (0, 0)))
        b1_2d = jnp.pad(b1_2d, ((0, 0), (0, nh_pad - n_hidden)))

    w2_bf = w2.astype(jnp.bfloat16)                       # [n_classes, n_hidden]
    b2_2d = b2.astype(jnp.float32)[None, :]               # [1, n_classes]
    if nh_pad != n_hidden:
        w2_bf = jnp.pad(w2_bf, ((0, 0), (0, nh_pad - n_hidden)))
    if nc_pad != n_classes:
        w2_bf = jnp.pad(w2_bf, ((0, nc_pad - n_classes), (0, 0)))
        b2_2d = jnp.pad(b2_2d, ((0, 0), (0, nc_pad - n_classes)))

    grid = (b_pad // tile_b,)

    in_specs = [
        pl.BlockSpec((tile_b, n_features), lambda i: (i, 0)),   # x: tiled over batch
        pl.BlockSpec((nh_pad, n_features), lambda i: (0, 0)),   # W1: resident
        pl.BlockSpec((1, nh_pad), lambda i: (0, 0)),            # b1: resident
        pl.BlockSpec((nc_pad, nh_pad), lambda i: (0, 0)),       # W2: resident
        pl.BlockSpec((1, nc_pad), lambda i: (0, 0)),            # b2: resident
    ]
    out_specs = pl.BlockSpec((tile_b, nc_pad), lambda i: (i, 0))

    cost = pl.CostEstimate(
        flops=2 * b_pad * (n_features * nh_pad + nh_pad * nc_pad),
        transcendentals=b_pad * nc_pad,  # sigmoid exp
        bytes_accessed=(x_bf.size * 2 + w1_bf.size * 2 + w2_bf.size * 2
                        + b1_2d.size * 4 + b2_2d.size * 4
                        + b_pad * nc_pad * 4),
    )

    out_padded = pl.pallas_call(
        _mlp_kernel,
        out_shape=jax.ShapeDtypeStruct((b_pad, nc_pad), jnp.float32),
        grid=grid,
        in_specs=in_specs,
        out_specs=out_specs,
        compiler_params=pltpu.CompilerParams(
            dimension_semantics=("parallel",)),
        cost_estimate=cost,
    )(x_bf, w1_bf, b1_2d, w2_bf, b2_2d)

    return out_padded[:B, :n_classes]


def _init_params(key, n_features, n_hidden, n_classes):
    """Deterministic init mimicking torch.nn.Linear's U(-1/sqrt(fan_in), ...)."""
    k1, k2, k3, k4 = jax.random.split(key, 4)
    bound1 = 1.0 / jnp.sqrt(n_features)
    bound2 = 1.0 / jnp.sqrt(n_hidden)
    w1 = jax.random.uniform(k1, (n_hidden, n_features), jnp.float32, -bound1, bound1)
    b1 = jax.random.uniform(k2, (n_hidden,), jnp.float32, -bound1, bound1)
    w2 = jax.random.uniform(k3, (n_classes, n_hidden), jnp.float32, -bound2, bound2)
    b2 = jax.random.uniform(k4, (n_classes,), jnp.float32, -bound2, bound2)
    return w1, b1, w2, b2


if __name__ == "__main__":
    key = jax.random.PRNGKey(0)
    k_x, k_p = jax.random.split(key)

    batch, n_features, n_hidden, n_classes = 8, 16, 32, 4
    x = jax.random.normal(k_x, (batch, n_features), jnp.float32)
    w1, b1, w2, b2 = _init_params(k_p, n_features, n_hidden, n_classes)

    out = jax.block_until_ready(net_forward(x, w1, b1, w2, b2))
    assert out.shape == (batch, n_classes)

    # Reference matching the kernel's precision path (bf16 matmul inputs,
    # f32 accumulation / elementwise).
    xb = x.astype(jnp.bfloat16).astype(jnp.float32)
    w1b = w1.astype(jnp.bfloat16).astype(jnp.float32)
    w2b = w2.astype(jnp.bfloat16).astype(jnp.float32)
    h_ref = jnp.maximum(xb @ w1b.T + b1, 0.0)
    h_ref = h_ref.astype(jnp.bfloat16).astype(jnp.float32)
    ref = jax.nn.sigmoid(h_ref @ w2b.T + b2)
    assert jnp.allclose(out, ref, atol=1e-3, rtol=1e-3)

    # Sanity vs pure-f32 math (looser tolerance for bf16 input rounding).
    ref_f32 = jax.nn.sigmoid(jnp.maximum(x @ w1.T + b1, 0.0) @ w2.T + b2)
    assert jnp.allclose(out, ref_f32, atol=2e-2, rtol=2e-2)

    print("KERNEL_OK")
</pallas_src>

<mosaic_0001>
module attributes {stable_mosaic.version = 11 : i64} {
  func.func @_mlp_kernel(%arg0: i32, %arg1: memref<8x16xbf16, #tpu.memory_space<vmem>>, %arg2: memref<128x16xbf16, #tpu.memory_space<vmem>>, %arg3: memref<1x128xf32, #tpu.memory_space<vmem>>, %arg4: memref<128x128xbf16, #tpu.memory_space<vmem>>, %arg5: memref<1x128xf32, #tpu.memory_space<vmem>>, %arg6: memref<8x128xf32, #tpu.memory_space<vmem>>) attributes {dimension_semantics = [#tpu.dimension_semantics<parallel>], iteration_bounds = array<i64: 1>, scalar_prefetch = 0 : i64, scratch_operands = 0 : i64, tpu.core_type = #tpu.core_type<tc>, window_params = [{transform_indices = @transform_0, window_bounds = array<i64: 8, 16>}, {pipeline_mode = #tpu.pipeline_mode<synchronous>, transform_indices = @transform_1, window_bounds = array<i64: 128, 16>}, {pipeline_mode = #tpu.pipeline_mode<synchronous>, transform_indices = @transform_2, window_bounds = array<i64: 1, 128>}, {pipeline_mode = #tpu.pipeline_mode<synchronous>, transform_indices = @transform_3, window_bounds = array<i64: 128, 128>}, {pipeline_mode = #tpu.pipeline_mode<synchronous>, transform_indices = @transform_4, window_bounds = array<i64: 1, 128>}, {transform_indices = @transform_5, window_bounds = array<i64: 8, 128>}]} {
    %c0 = arith.constant 0 : index
    %c0_0 = arith.constant 0 : index
    %0 = vector.load %arg1[%c0, %c0_0] : memref<8x16xbf16, #tpu.memory_space<vmem>>, vector<8x16xbf16>
    %c0_1 = arith.constant 0 : index
    %c0_2 = arith.constant 0 : index
    %1 = vector.load %arg2[%c0_1, %c0_2] : memref<128x16xbf16, #tpu.memory_space<vmem>>, vector<128x16xbf16>
    %cst = arith.constant dense<0.000000e+00> : vector<8x128xf32>
    %2 = tpu.matmul %0, %1, %cst {dimension_numbers = #tpu.dot_dimension_numbers<[1], [1], [0], [0], [0, 0, 1, 0], [], []>} : vector<8x16xbf16>, vector<128x16xbf16>, vector<8x128xf32> -> vector<8x128xf32>
    %c0_3 = arith.constant 0 : index
    %c0_4 = arith.constant 0 : index
    %3 = vector.load %arg3[%c0_3, %c0_4] : memref<1x128xf32, #tpu.memory_space<vmem>>, vector<1x128xf32>
    %4 = vector.broadcast %3 : vector<1x128xf32> to vector<8x128xf32>
    %5 = arith.addf %2, %4 : vector<8x128xf32>
    %cst_5 = arith.constant 0.000000e+00 : f32
    %6 = vector.broadcast %cst_5 : f32 to vector<8x128xf32>
    %7 = arith.maximumf %5, %6 : vector<8x128xf32>
    %8 = arith.truncf %7 : vector<8x128xf32> to vector<8x128xbf16>
    %c0_6 = arith.constant 0 : index
    %c0_7 = arith.constant 0 : index
    %9 = vector.load %arg4[%c0_6, %c0_7] : memref<128x128xbf16, #tpu.memory_space<vmem>>, vector<128x128xbf16>
    %cst_8 = arith.constant dense<0.000000e+00> : vector<8x128xf32>
    %10 = tpu.matmul %8, %9, %cst_8 {dimension_numbers = #tpu.dot_dimension_numbers<[1], [1], [0], [0], [0, 0, 1, 0], [], []>} : vector<8x128xbf16>, vector<128x128xbf16>, vector<8x128xf32> -> vector<8x128xf32>
    %c0_9 = arith.constant 0 : index
    %c0_10 = arith.constant 0 : index
    %11 = vector.load %arg5[%c0_9, %c0_10] : memref<1x128xf32, #tpu.memory_space<vmem>>, vector<1x128xf32>
    %12 = vector.broadcast %11 : vector<1x128xf32> to vector<8x128xf32>
    %13 = arith.addf %10, %12 : vector<8x128xf32>
    %14 = arith.negf %13 : vector<8x128xf32>
    %15 = math.exp %14 : vector<8x128xf32>
    %cst_11 = arith.constant 1.000000e+00 : f32
    %16 = vector.broadcast %cst_11 : f32 to vector<8x128xf32>
    %17 = arith.addf %16, %15 : vector<8x128xf32>
    %18 = arith.divf %16, %17 : vector<8x128xf32>
    %c0_12 = arith.constant 0 : index
    %c0_13 = arith.constant 0 : index
    %19 = vector.load %arg6[%c0_12, %c0_13] : memref<8x128xf32, #tpu.memory_space<vmem>>, vector<8x128xf32>
    tpu.vector_store %arg6[%c0_12, %c0_13], %18 {strides = array<i32>} : memref<8x128xf32, #tpu.memory_space<vmem>>, vector<8x128xf32>,
    return
  }
  func.func @transform_0(%arg0: i32) -> (i32, i32) {
    %c0_i32 = arith.constant 0 : i32
    %c0_i32_0 = arith.constant 0 : i32
    return %arg0, %c0_i32 : i32, i32
  }
  func.func @transform_1(%arg0: i32) -> (i32, i32) {
    %c0_i32 = arith.constant 0 : i32
    %c0_i32_0 = arith.constant 0 : i32
    %c0_i32_1 = arith.constant 0 : i32
    return %c0_i32, %c0_i32_0 : i32, i32
  }
  func.func @transform_2(%arg0: i32) -> (i32, i32) {
    %c0_i32 = arith.constant 0 : i32
    %c0_i32_0 = arith.constant 0 : i32
    %c0_i32_1 = arith.constant 0 : i32
    return %c0_i32, %c0_i32_0 : i32, i32
  }
  func.func @transform_3(%arg0: i32) -> (i32, i32) {
    %c0_i32 = arith.constant 0 : i32
    %c0_i32_0 = arith.constant 0 : i32
    %c0_i32_1 = arith.constant 0 : i32
    return %c0_i32, %c0_i32_0 : i32, i32
  }
  func.func @transform_4(%arg0: i32) -> (i32, i32) {
    %c0_i32 = arith.constant 0 : i32
    %c0_i32_0 = arith.constant 0 : i32
    %c0_i32_1 = arith.constant 0 : i32
    return %c0_i32, %c0_i32_0 : i32, i32
  }
  func.func @transform_5(%arg0: i32) -> (i32, i32) {
    %c0_i32 = arith.constant 0 : i32
    %c0_i32_0 = arith.constant 0 : i32
    return %arg0, %c0_i32 : i32, i32
  }
}

</mosaic_0001>

<bundles_post_ra>
// kernel: tpu_custom_call.1
= control target key start
LH: loop header
LB: loop body
LE: loop exit
PB: predicated region body
PF: predicated region fallthrough
CT: control target
= control target key end

     0   :  { %v413_v1 = vmov 0.0   ;;  %vm86_vm0 = vcmask 130048   ;;  %vm414_vm1 = vmmov 0   ;;  %s524_s0 = inlined_call_operand.vmem [shape: bf16[8,16], index: 0, kind: input, shape index: {}]   ;;  %s525_s1 = inlined_call_operand.vmem [shape: bf16[128,16], index: 1, kind: input, shape index: {}]   ;;  %s526_s2 = inlined_call_operand.vmem [shape: f32[1,128], index: 2, kind: input, shape index: {}]   ;;  %s527_s3 = inlined_call_operand.vmem [shape: bf16[128,128], index: 3, kind: input, shape index: {}]   ;;  %s528_s4 = inlined_call_operand.vmem [shape: f32[1,128], index: 4, kind: input, shape index: {}]   ;;  %s529_s5 = inlined_call_operand.hbm [shape: f32[8,128], index: 5, kind: output, shape index: {}]  }
   0x1   :  { %v369_v0 = vld [vmem:[%s525_s1] sm:$0xff]   ;;  %326 = vmatprep.subr.bf16.mxu0 %v413_v1  ;;  %346 = vmatprep.subr.bf16.mxu1 %v413_v1  ;;  %v370_v3 = vld [vmem:[%s525_s1 + $0x8] sm:$0xff]   ;;  %v371_v6 = vld [vmem:[%s525_s1 + $0x10] sm:$0xff]  }
   0x2   :  { %v91_v2 = vsel %vm86_vm0, %v369_v0, 0  ;;  %v94_v4 = vsel %vm86_vm0, %v370_v3, 0  ;;  %342 = vmatprep.mubr.msk.bf16.mxu0 %vm414_vm1, %v413_v1  ;;  %v377_v5 = vld [vmem:[%s527_s3] sm:$0xff]   ;;  %362 = vmatprep.mubr.msk.bf16.mxu1 %vm414_vm1, %v413_v1  ;;  %v97_v7 = vsel %vm86_vm0, %v371_v6, 0  ;;  %v378_v8 = vld [vmem:[%s527_s3 + $0x8] sm:$0xff]  }
   0x3   :  { %327 = vmatpush3.bf16.xpose.msra.mxu0 %v91_v2  ;;  %347 = vmatpush3.bf16.xpose.msra.mxu1 %v377_v5 }
   0x4   :  { %328 = vmatprep.subr.bf16.mxu0 %v413_v1  ;;  %348 = vmatprep.subr.bf16.mxu1 %v413_v1 }
   0xb   :  { %329 = vmatpush3.bf16.xpose.msra.mxu0 %v94_v4 }
   0xc   :  { %330 = vmatprep.subr.bf16.mxu0 %v413_v1 }
   0xd   :  { %10 = vsyncpa [#allocation3], 0  ;;  %349 = vmatpush3.bf16.xpose.msra.mxu1 %v378_v8  ;;  %v372_v9 = vld [vmem:[%s525_s1 + $0x18] sm:$0xff]   ;;  %v379_v10 = vld [vmem:[%s527_s3 + $0x10] sm:$0xff]  }
   0xe   :  { %350 = vmatprep.subr.bf16.mxu1 %v413_v1  ;;  %v100_v11 = vsel %vm86_vm0, %v372_v9, 0  ;;  %v373_v12 = vld [vmem:[%s525_s1 + $0x20] sm:$0xff]   ;;  %v380_v13 = vld [vmem:[%s527_s3 + $0x18] sm:$0xff]   ;;  %v374_v15 = vld [vmem:[%s525_s1 + $0x28] sm:$0xff]  }
   0xf   :  { %v103_v14 = vsel %vm86_vm0, %v373_v12, 0  ;;  %v381_v16 = vld [vmem:[%s527_s3 + $0x20] sm:$0xff]   ;;  %v106_v17 = vsel %vm86_vm0, %v374_v15, 0  ;;  %v375_v18 = vld [vmem:[%s525_s1 + $0x30] sm:$0xff]   ;;  %v382_v19 = vld [vmem:[%s527_s3 + $0x28] sm:$0xff]  }
  0x10   :  { %v109_v20 = vsel %vm86_vm0, %v375_v18, 0  ;;  %v376_v21 = vld [vmem:[%s525_s1 + $0x38] sm:$0xff]   ;;  %v383_v22 = vld [vmem:[%s527_s3 + $0x30] sm:$0xff]   ;;  %v22_v24 = vld [vmem:[%s524_s0] sm:$0xf] }
  0x11   :  { %v112_v23 = vsel %vm86_vm0, %v376_v21, 0  ;;  %v384_v25 = vld [vmem:[%s527_s3 + $0x38] sm:$0xff]   ;;  %v288_v26 = vld [vmem:[%s526_s2] ss:$0 sm:$0xff]  ;;  %s415_s2 = smov [#allocation2]  }
  0x12   :  { %v298_v34 = vld [vmem:[%s528_s4] ss:$0 sm:$0xff]  ;;  %s280_s3 = sshll.u32 %s415_s2, 4  ;;  %s281_s3 = int_to_ptr.vmem [resolvable:$true] %s280_s3 }
  0x13   :  { %331 = vmatpush3.bf16.xpose.msra.mxu0 %v97_v7  ;;  %s389_s29 = scalar_lea.vmem %s281_s3, 128  ;;  %p394_p1 = scmp.lt.s32.totalorder %s281_s3, %s281_s3 }
  0x14   :  { %332 = vmatprep.subr.bf16.mxu0 %v413_v1  ;;  %p390_p0 = scmp.ne.s32.totalorder %s281_s3, %s389_s29  ;;  %p395_p2 = scmp.lt.s32.totalorder %s389_s29, %s389_s29 }
  0x15   :  { %351 = vmatpush3.bf16.xpose.msra.mxu1 %v379_v10 }
  0x16   :  { %352 = vmatprep.subr.bf16.mxu1 %v413_v1  ;;  %p396_p3 = por %p395_p2, %p394_p1 }
  0x18   :  { %p397_p4 = pnand %p396_p3, %p390_p0 }
  0x1b   :  { %333 = vmatpush3.bf16.xpose.msra.mxu0 %v100_v11 }
  0x1c   :  { %334 = vmatprep.subr.bf16.mxu0 %v413_v1 }
  0x1d   :  { %353 = vmatpush3.bf16.xpose.msra.mxu1 %v380_v13 }
  0x1e   :  { %354 = vmatprep.subr.bf16.mxu1 %v413_v1 }
  0x23   :  { %335 = vmatpush3.bf16.xpose.msra.mxu0 %v103_v14 }
  0x24   :  { %336 = vmatprep.subr.bf16.mxu0 %v413_v1 }
  0x25   :  { %355 = vmatpush3.bf16.xpose.msra.mxu1 %v381_v16 }
  0x26   :  { %356 = vmatprep.subr.bf16.mxu1 %v413_v1 }
  0x2b   :  { %337 = vmatpush3.bf16.xpose.msra.mxu0 %v106_v17 }
  0x2c   :  { %338 = vmatprep.subr.bf16.mxu0 %v413_v1 }
  0x2d   :  { %357 = vmatpush3.bf16.xpose.msra.mxu1 %v382_v19 }
  0x2e   :  { %358 = vmatprep.subr.bf16.mxu1 %v413_v1 }
  0x33   :  { %339 = vmatpush3.bf16.xpose.msra.mxu0 %v109_v20 }
  0x34   :  { %340 = vmatprep.subr.bf16.mxu0 %v413_v1 }
  0x35   :  { %359 = vmatpush3.bf16.xpose.msra.mxu1 %v383_v22 }
  0x36   :  { %360 = vmatprep.subr.bf16.mxu1 %v413_v1 }
  0x3b   :  { %341 = vmatpush3.bf16.xpose.msra.mxu0 %v112_v23 }
  0x3d   :  { %361 = vmatpush3.bf16.xpose.msra.mxu1 %v384_v25 }
  0x42   :  { %343 = vmatmul.mubr.msk.bf16.vlgmr.msra.gmra.mrb[0].mxu0 %vm86_vm0, %v22_v24 }
 0x115   :  { %v148_v27 = vpop.f32.mrb[0].mxu0 }
 0x116   :  { %v149_v28 = vadd.f32 %v288_v26, %v148_v27  ;;  %v344_v29 = vpop.f32.mrb[1].mxu0 }
 0x117   :  { %v151_v30 = vpop.f32.mrb[2].mxu0 }
 0x118   :  { %v154_v31 = vmax.f32 %v149_v28, 0.0  ;;  %v345_v32 = vpop.f32.mrb[3].mxu0 }
 0x11a   :  { %v155_v33 = vpack.c.bf16 %v154_v31, %v154_v31 }
 0x11c   :  { %363 = vmatmul.mubr.bf16.vlgmr.msra.gmra.mrb[0].mxu1 %v155_v33 }
 0x1ef   :  { %v261_v35 = vpop.f32.mrb[0].mxu1 }
 0x1f0   :  { %v262_v36 = vadd.f32 %v298_v34, %v261_v35  ;;  %v364_v37 = vpop.f32.mrb[1].mxu1 }
 0x1f1   :  { %v264_v38 = vpop.f32.mrb[2].mxu1 }
 0x1f2   :  { %v307_v39 = vmul.f32 -1.442695, %v262_v36  ;;  %v365_v40 = vpop.f32.mrb[3].mxu1 }
 0x1f4   :  { %385 = vpow2.f32 %v307_v39 }
 0x1fe   :  { %v386_v41 = vpop.eup %385 }
 0x1ff   :  { %v270_v42 = vadd.f32 1.0, %v386_v41 }
 0x201   :  { %387 = vrcp.f32 %v270_v42 }
 0x20b   :  { %v388_v43 = vpop.eup %387 }
 0x20c   :  { %273 = vst [vmem:[#allocation2] sm:$0xff] %v388_v43 }
 0x20d   :  { %400 = shalt.err (!%p397_p4)
}
 0x20e   :  { %s401_s6 = scalar_lea.hbm %s529_s5, 128 }
 0x20f   :  { %p402_p5 = scmp.ne.s32.totalorder %s529_s5, %s401_s6  ;;  %p405_p6 = scmp.lt.u32.totalorder %s401_s6, %s529_s5 }
 0x211   :  { %p407_p7 = pnand %p405_p6, %p402_p5 }
 0x213   :  { %410 = shalt.err (!%p407_p7)
}
 0x214   :  { %283 = dma.vmem_to_hbm [thread:$0]  %s281_s3, 128, %s529_s5, [#allocation3]  }
 0x215   :  { %411 = dma.done.wait [#allocation3], 128  }
 0x216   :  { %412 = vsyncadd [#allocation3], 4294967168 }
 0x217   :  { %287 = vsyncpa [#allocation3], 1 }

</bundles_post_ra>
